<compile_context>
chip_gen: v5e
topology: v5e:2x2
jax: 0.10.0
libtpu: 0.0.40
codegen_flags: <defaults>
</compile_context>

<pallas_src>
import math
import numpy as np
import jax
import jax.numpy as jnp
from jax.experimental import pallas as pl
from jax.experimental.pallas import tpu as pltpu


# ----------------------------- small math helpers -----------------------------
def _leaky_relu(x, slope=0.2):
    # slope > 0 so max(x, slope*x) == leaky_relu(x, slope); module uses 0.2.
    return jnp.maximum(x, slope * x)


def _sigmoid_kernel(x):
    # exp + approx reciprocal both live in the (otherwise idle) EUP slot.
    return pl.reciprocal(1.0 + jnp.exp(-x), approx=True)


def _sigmoid_ref(x):
    return 1.0 / (1.0 + jnp.exp(-x))


# --------------------------------- the kernel ---------------------------------
def sine_channel_kernel(x_ref, w_emb_ref, w_layers_ref, w_heads_ref,
                        shifts_ref, up_ref, cum_up_ref, bs_c_ref, br_c_ref,
                        scale_ref, out_ref):
    x = x_ref[0]                                   # (C_sl, N)   N = BB*S lanes
    C = w_emb_ref.shape[0]
    F = bs_c_ref.shape[0]

    # ---- 1x1 embedding conv + leaky relu ----
    emb = _leaky_relu(jnp.dot(w_emb_ref[...], x,
                              preferred_element_type=jnp.float32))    # (C, N)

    # constant block-diagonal shift matrices (host-built, per-batch padding):
    #   A @ m_right -> column t holds A[:, t-1] within its batch block (0 at t=0)
    #   A @ m_left  -> column t holds A[:, t+1] within its batch block
    m_right = shifts_ref[0]
    m_left = shifts_ref[1]

    # ---- three 3-tap convs (padding=1) + leaky relu ----
    # one fused weight matmul per layer: Z = [W_k0; W_k1; W_k2] @ emb
    for l in range(3):
        z = jnp.dot(w_layers_ref[l], emb,
                    preferred_element_type=jnp.float32)                # (3C, N)
        y = (jnp.dot(z[0:C], m_right, preferred_element_type=jnp.float32)
             + z[C:2 * C]
             + jnp.dot(z[2 * C:3 * C], m_left,
                       preferred_element_type=jnp.float32))
        emb = _leaky_relu(y)

    # ---- fused heads: one matmul + one sigmoid ----
    # rows: [amps (F) | freqs (F) | phases (F)]; scale/band factors are folded
    # into host-side constants, so no per-row rescale here.
    h = _sigmoid_kernel(jnp.dot(w_heads_ref[...], emb,
                                preferred_element_type=jnp.float32))   # (3F, N)

    # ---- upsample (per-batch) N -> P via one-hot block-diagonal matmuls ----
    # amps & freqs share the plain upsample matrix; phases use the fused
    # (2*pi * cumsum @ upsample) matrix.
    af_u = jnp.dot(h[0:2 * F], up_ref[...],
                   preferred_element_type=jnp.float32)                 # (2F, P)
    ph_u = jnp.dot(h[2 * F:3 * F], cum_up_ref[...],
                   preferred_element_type=jnp.float32)                 # (F, P)

    amps_u = af_u[0:F]
    freqs_u = af_u[F:2 * F]

    # arg = (band_starts + sig_f*band_ranges)_up * c + phases_up
    #     = sig_f_up * (band_ranges*c) + (band_starts*c) + ph_u
    arg = freqs_u * br_c_ref[...] + bs_c_ref[...] + ph_u               # (F, P)
    res = amps_u * jnp.sin(arg)
    summed = jnp.sum(res, axis=0, keepdims=True)                       # (1, P)
    out_ref[0] = scale_ref[0, 0] * summed                              # |scale| folded here


# --------------------------------- the wrapper ---------------------------------
def _num_grid_steps(B):
    # v7x has 2 TensorCores per chip; keep 2 "parallel" grid steps there so both
    # get work.  v5e/v6e have a single TC -> fully collapse the grid.
    try:
        kind = jax.devices()[0].device_kind.lower()
    except Exception:
        kind = ""
    if (("v7" in kind) or ("7x" in kind)) and B >= 2 and B % 2 == 0:
        return 2
    return 1


def sine_channel_generator(x, params, *, sl, input_size, target_size,
                           num_steps=None):
    B = x.shape[0]
    x = x.reshape(B, -1, input_size)
    x = x[:, sl, :].astype(jnp.float32)                  # (B, C_sl, S)
    C_sl, S = x.shape[1], x.shape[2]
    C = params["w_emb"].shape[0]
    F = params["w_amp"].shape[0]
    T = target_size

    G = _num_grid_steps(B) if num_steps is None else int(num_steps)
    if B % G != 0:
        G = 1
    BB = B // G                                          # batch elems per grid step
    N = BB * S                                           # fused lane width (inputs)

    LANES = 128
    P = max(LANES, ((BB * T + LANES - 1) // LANES) * LANES)   # lane-dense output

    # fold BB batch elements into the lane axis per grid step
    xg = x.reshape(G, BB, C_sl, S).transpose(0, 2, 1, 3).reshape(G, C_sl, N)

    # ---------- structural constants (pure numpy, shapes only) ----------
    # nearest upsample: src = (t*S)//T (integer arithmetic, matches PyTorch)
    src = (np.arange(T) * S) // T
    up_T = np.zeros((S, T), np.float32)
    up_T[src, np.arange(T)] = 1.0
    cum_mat = np.triu(np.ones((S, S), np.float32))        # rows <= cols -> cumsum
    eye_bb = np.eye(BB, dtype=np.float32)

    up_np = np.zeros((N, P), np.float32)
    up_np[:, :BB * T] = np.kron(eye_bb, up_T)
    cum_up_np = np.zeros((N, P), np.float32)
    cum_up_np[:, :BB * T] = (2.0 * math.pi) * np.kron(eye_bb, cum_mat @ up_T)

    c_np = np.zeros((1, P), np.float32)
    c_np[0, :BB * T] = np.tile(
        np.linspace(-math.pi, math.pi, T, dtype=np.float32), BB)

    r = np.arange(S)
    m_right = (r[None, :] == r[:, None] + 1).astype(np.float32)   # col == row+1
    m_left = (r[:, None] == r[None, :] + 1).astype(np.float32)    # row == col+1
    shifts_np = np.stack([np.kron(eye_bb, m_right),
                          np.kron(eye_bb, m_left)], axis=0)       # (2, N, N)

    up = jnp.asarray(up_np)
    cum_up = jnp.asarray(cum_up_np)
    c = jnp.asarray(c_np)
    shifts = jnp.asarray(shifts_np)

    # ---------- parameter-derived constants (jnp, stays traceable) ----------
    band_starts = params["band_starts"].astype(jnp.float32).reshape(F, 1)
    band_ranges = params["band_ranges"].astype(jnp.float32).reshape(F, 1)
    bs_c = band_starts * c                                     # (F, P)
    br_c = band_ranges * c                                     # (F, P)
    scale_abs = jnp.abs(params["scale"].astype(jnp.float32)).reshape(1, 1)

    def stack_layer(w):       # (C, C, 3) -> (3C, C) = [W_k0; W_k1; W_k2]
        w = w.astype(jnp.float32)
        return jnp.concatenate([w[:, :, 0], w[:, :, 1], w[:, :, 2]], axis=0)

    w_layers = jnp.stack([stack_layer(params["w1"]),
                          stack_layer(params["w2"]),
                          stack_layer(params["w3"])], axis=0)        # (3, 3C, C)
    w_heads = jnp.concatenate([params["w_amp"], params["w_freq"],
                               params["w_phase"]], axis=0).astype(jnp.float32)
    w_emb = params["w_emb"].astype(jnp.float32)

    in_specs = [
        pl.BlockSpec((1, C_sl, N), lambda g: (g, 0, 0)),         # x (batch-fused)
        pl.BlockSpec((C, C_sl), lambda g: (0, 0)),               # w_emb
        pl.BlockSpec((3, 3 * C, C), lambda g: (0, 0, 0)),        # stacked conv weights
        pl.BlockSpec((3 * F, C), lambda g: (0, 0)),              # stacked head weights
        pl.BlockSpec((2, N, N), lambda g: (0, 0, 0)),            # block-diag shifts
        pl.BlockSpec((N, P), lambda g: (0, 0)),                  # block-diag upsample
        pl.BlockSpec((N, P), lambda g: (0, 0)),                  # 2*pi*cumsum@upsample
        pl.BlockSpec((F, P), lambda g: (0, 0)),                  # band_starts * c
        pl.BlockSpec((F, P), lambda g: (0, 0)),                  # band_ranges * c
        pl.BlockSpec(memory_space=pltpu.MemorySpace.SMEM),       # |scale| scalar
    ]
    out_specs = pl.BlockSpec((1, 1, P), lambda g: (g, 0, 0))

    out = pl.pallas_call(
        sine_channel_kernel,
        out_shape=jax.ShapeDtypeStruct((G, 1, P), jnp.float32),
        grid_spec=pltpu.PrefetchScalarGridSpec(
            num_scalar_prefetch=0,
            grid=(G,),
            in_specs=in_specs,
            out_specs=out_specs,
        ),
        compiler_params=pltpu.CompilerParams(dimension_semantics=("parallel",)),
    )(xg, w_emb, w_layers, w_heads, shifts, up, cum_up, bs_c, br_c, scale_abs)

    # un-fuse batch from lanes, drop lane padding
    out = out[:, 0, :BB * T].reshape(G, BB, T).reshape(B, 1, T)
    return out


# ------------------------------ pure-JAX reference ------------------------------
def reference(x, params, *, sl, input_size, target_size):
    B = x.shape[0]
    x = x.reshape(B, -1, input_size)[:, sl, :].astype(jnp.float32)
    S = x.shape[2]
    T = target_size

    emb = _leaky_relu(jnp.einsum("oc,bcs->bos", params["w_emb"], x))
    for w in (params["w1"], params["w2"], params["w3"]):
        xp = jnp.pad(emb, ((0, 0), (0, 0), (1, 1)))
        y = sum(jnp.einsum("oc,bcs->bos", w[:, :, k], xp[:, :, k:k + S])
                for k in range(3))
        emb = _leaky_relu(y)

    amps = _sigmoid_ref(jnp.einsum("oc,bcs->bos", params["w_amp"], emb))
    freqs = _sigmoid_ref(jnp.einsum("oc,bcs->bos", params["w_freq"], emb))
    phases = _sigmoid_ref(jnp.einsum("oc,bcs->bos", params["w_phase"], emb))

    phases = jnp.cumsum(phases * 2.0 * math.pi, axis=-1)
    freqs = (params["band_starts"][None, :, None]
             + freqs * params["band_ranges"][None, :, None])
    amps = amps * jnp.abs(params["scale"][0])

    src = (np.arange(T) * S) // T                     # integer nearest indexing
    amps = amps[:, :, src]
    freqs = freqs[:, :, src]
    phases = phases[:, :, src]

    c = jnp.linspace(-math.pi, math.pi, T, dtype=jnp.float32)
    res = amps * jnp.sin(freqs * c[None, None, :] + phases)
    return jnp.sum(res, axis=1, keepdims=True)


# ------------------------------------- main -------------------------------------
if __name__ == "__main__":
    # small, module-consistent shapes
    batch = 2
    in_channels = 8          # channels before slicing
    input_size = 8           # S
    target_size = 64         # T
    channels = 32
    fbc = 8                  # filter_bank_channels == len(fb.scale)
    sl = slice(2, 6)         # sl.stop - sl.start = 4 -> embedding in-channels

    key = jax.random.PRNGKey(0)
    ks = jax.random.split(key, 9)
    params = {
        "w_emb":  0.3 * jax.random.normal(ks[0], (channels, sl.stop - sl.start), jnp.float32),
        "w1":     0.1 * jax.random.normal(ks[1], (channels, channels, 3), jnp.float32),
        "w2":     0.1 * jax.random.normal(ks[2], (channels, channels, 3), jnp.float32),
        "w3":     0.1 * jax.random.normal(ks[3], (channels, channels, 3), jnp.float32),
        "w_amp":  0.1 * jax.random.normal(ks[4], (fbc, channels), jnp.float32),
        "w_freq": 0.1 * jax.random.normal(ks[5], (fbc, channels), jnp.float32),
        "w_phase": 0.1 * jax.random.normal(ks[6], (fbc, channels), jnp.float32),
        "scale":  jnp.full((1,), 0.0001, jnp.float32),
    }
    # band geometry, exactly as in __init__ (len(scale) == fbc)
    band_starts_np = np.geomspace(target_size // 4, target_size // 2, fbc + 1)
    params["band_starts"] = jnp.asarray(band_starts_np[:-1].astype(np.float32))
    params["band_ranges"] = jnp.asarray(np.diff(band_starts_np).astype(np.float32))

    x = jax.random.normal(ks[7], (batch, in_channels, input_size), jnp.float32)

    out = sine_channel_generator(x, params, sl=sl, input_size=input_size,
                                 target_size=target_size)
    out = jax.block_until_ready(out)

    ref = jax.block_until_ready(
        reference(x, params, sl=sl, input_size=input_size, target_size=target_size))

    assert out.shape == (batch, 1, target_size), out.shape
    # tolerance loosened slightly vs. exact-sigmoid version because the kernel's
    # sigmoid uses the EUP approx reciprocal.
    np.testing.assert_allclose(np.asarray(out), np.asarray(ref), rtol=3e-3, atol=5e-5)
    print("KERNEL_OK")
</pallas_src>

<mosaic_0001>
module attributes {stable_mosaic.version = 11 : i64} {
  func.func @sine_channel_kernel(%arg0: i32, %arg1: memref<1x4x16xf32, #tpu.memory_space<vmem>>, %arg2: memref<32x4xf32, #tpu.memory_space<vmem>>, %arg3: memref<3x96x32xf32, #tpu.memory_space<vmem>>, %arg4: memref<24x32xf32, #tpu.memory_space<vmem>>, %arg5: memref<2x16x16xf32, #tpu.memory_space<vmem>>, %arg6: memref<16x128xf32, #tpu.memory_space<vmem>>, %arg7: memref<16x128xf32, #tpu.memory_space<vmem>>, %arg8: memref<8x128xf32, #tpu.memory_space<vmem>>, %arg9: memref<8x128xf32, #tpu.memory_space<vmem>>, %arg10: memref<1x1xf32, #tpu.memory_space<smem>>, %arg11: memref<1x1x128xf32, #tpu.memory_space<vmem>>) attributes {dimension_semantics = [#tpu.dimension_semantics<parallel>], iteration_bounds = array<i64: 1>, scalar_prefetch = 0 : i64, scratch_operands = 0 : i64, tpu.core_type = #tpu.core_type<tc>, window_params = [{transform_indices = @transform_0, window_bounds = array<i64: 1, 4, 16>}, {pipeline_mode = #tpu.pipeline_mode<synchronous>, transform_indices = @transform_1, window_bounds = array<i64: 32, 4>}, {pipeline_mode = #tpu.pipeline_mode<synchronous>, transform_indices = @transform_2, window_bounds = array<i64: 3, 96, 32>}, {pipeline_mode = #tpu.pipeline_mode<synchronous>, transform_indices = @transform_3, window_bounds = array<i64: 24, 32>}, {pipeline_mode = #tpu.pipeline_mode<synchronous>, transform_indices = @transform_4, window_bounds = array<i64: 2, 16, 16>}, {pipeline_mode = #tpu.pipeline_mode<synchronous>, transform_indices = @transform_5, window_bounds = array<i64: 16, 128>}, {pipeline_mode = #tpu.pipeline_mode<synchronous>, transform_indices = @transform_6, window_bounds = array<i64: 16, 128>}, {pipeline_mode = #tpu.pipeline_mode<synchronous>, transform_indices = @transform_7, window_bounds = array<i64: 8, 128>}, {pipeline_mode = #tpu.pipeline_mode<synchronous>, transform_indices = @transform_8, window_bounds = array<i64: 8, 128>}, {transform_indices = @transform_9, window_bounds = array<i64: 1, 1>}, {transform_indices = @transform_10, window_bounds = array<i64: 1, 1, 128>}]} {
    %c0 = arith.constant 0 : index
    %c0_0 = arith.constant 0 : index
    %c0_1 = arith.constant 0 : index
    %0 = vector.load %arg1[%c0, %c0_0, %c0_1] : memref<1x4x16xf32, #tpu.memory_space<vmem>>, vector<1x4x16xf32>
    %1 = vector.shape_cast %0 : vector<1x4x16xf32> to vector<4x16xf32>
    %c0_2 = arith.constant 0 : index
    %c0_3 = arith.constant 0 : index
    %2 = vector.load %arg2[%c0_2, %c0_3] : memref<32x4xf32, #tpu.memory_space<vmem>>, vector<32x4xf32>
    %cst = arith.constant dense<0.000000e+00> : vector<32x16xf32>
    %3 = tpu.matmul %2, %1, %cst {dimension_numbers = #tpu.dot_dimension_numbers<[1], [0], [0], [1], [0, 0, 1, 1], [], []>} : vector<32x4xf32>, vector<4x16xf32>, vector<32x16xf32> -> vector<32x16xf32>
    %cst_4 = arith.constant 2.000000e-01 : f32
    %4 = vector.broadcast %cst_4 : f32 to vector<32x16xf32>
    %5 = arith.mulf %4, %3 : vector<32x16xf32>
    %6 = arith.maximumf %3, %5 : vector<32x16xf32>
    %c0_5 = arith.constant 0 : index
    %c0_6 = arith.constant 0 : index
    %c0_7 = arith.constant 0 : index
    %7 = vector.load %arg5[%c0_5, %c0_6, %c0_7] : memref<2x16x16xf32, #tpu.memory_space<vmem>>, vector<1x16x16xf32>
    %8 = vector.shape_cast %7 : vector<1x16x16xf32> to vector<16x16xf32>
    %c1 = arith.constant 1 : index
    %c0_8 = arith.constant 0 : index
    %c0_9 = arith.constant 0 : index
    %9 = vector.load %arg5[%c1, %c0_8, %c0_9] : memref<2x16x16xf32, #tpu.memory_space<vmem>>, vector<1x16x16xf32>
    %10 = vector.shape_cast %9 : vector<1x16x16xf32> to vector<16x16xf32>
    %c0_10 = arith.constant 0 : index
    %c0_11 = arith.constant 0 : index
    %c0_12 = arith.constant 0 : index
    %11 = vector.load %arg3[%c0_10, %c0_11, %c0_12] : memref<3x96x32xf32, #tpu.memory_space<vmem>>, vector<1x96x32xf32>
    %12 = vector.shape_cast %11 : vector<1x96x32xf32> to vector<96x32xf32>
    %cst_13 = arith.constant dense<0.000000e+00> : vector<96x16xf32>
    %13 = tpu.matmul %12, %6, %cst_13 {dimension_numbers = #tpu.dot_dimension_numbers<[1], [0], [0], [1], [0, 0, 1, 1], [], []>} : vector<96x32xf32>, vector<32x16xf32>, vector<96x16xf32> -> vector<96x16xf32>
    %14 = vector.extract_strided_slice %13 {offsets = [0, 0], sizes = [32, 16], strides = [1, 1]} : vector<96x16xf32> to vector<32x16xf32>
    %cst_14 = arith.constant dense<0.000000e+00> : vector<32x16xf32>
    %15 = tpu.matmul %14, %8, %cst_14 {dimension_numbers = #tpu.dot_dimension_numbers<[1], [0], [0], [1], [0, 0, 1, 1], [], []>} : vector<32x16xf32>, vector<16x16xf32>, vector<32x16xf32> -> vector<32x16xf32>
    %16 = vector.extract_strided_slice %13 {offsets = [32, 0], sizes = [32, 16], strides = [1, 1]} : vector<96x16xf32> to vector<32x16xf32>
    %17 = arith.addf %15, %16 : vector<32x16xf32>
    %18 = vector.extract_strided_slice %13 {offsets = [64, 0], sizes = [32, 16], strides = [1, 1]} : vector<96x16xf32> to vector<32x16xf32>
    %cst_15 = arith.constant dense<0.000000e+00> : vector<32x16xf32>
    %19 = tpu.matmul %18, %10, %cst_15 {dimension_numbers = #tpu.dot_dimension_numbers<[1], [0], [0], [1], [0, 0, 1, 1], [], []>} : vector<32x16xf32>, vector<16x16xf32>, vector<32x16xf32> -> vector<32x16xf32>
    %20 = arith.addf %17, %19 : vector<32x16xf32>
    %cst_16 = arith.constant 2.000000e-01 : f32
    %21 = vector.broadcast %cst_16 : f32 to vector<32x16xf32>
    %22 = arith.mulf %21, %20 : vector<32x16xf32>
    %23 = arith.maximumf %20, %22 : vector<32x16xf32>
    %c1_17 = arith.constant 1 : index
    %c0_18 = arith.constant 0 : index
    %c0_19 = arith.constant 0 : index
    %24 = vector.load %arg3[%c1_17, %c0_18, %c0_19] : memref<3x96x32xf32, #tpu.memory_space<vmem>>, vector<1x96x32xf32>
    %25 = vector.shape_cast %24 : vector<1x96x32xf32> to vector<96x32xf32>
    %cst_20 = arith.constant dense<0.000000e+00> : vector<96x16xf32>
    %26 = tpu.matmul %25, %23, %cst_20 {dimension_numbers = #tpu.dot_dimension_numbers<[1], [0], [0], [1], [0, 0, 1, 1], [], []>} : vector<96x32xf32>, vector<32x16xf32>, vector<96x16xf32> -> vector<96x16xf32>
    %27 = vector.extract_strided_slice %26 {offsets = [0, 0], sizes = [32, 16], strides = [1, 1]} : vector<96x16xf32> to vector<32x16xf32>
    %cst_21 = arith.constant dense<0.000000e+00> : vector<32x16xf32>
    %28 = tpu.matmul %27, %8, %cst_21 {dimension_numbers = #tpu.dot_dimension_numbers<[1], [0], [0], [1], [0, 0, 1, 1], [], []>} : vector<32x16xf32>, vector<16x16xf32>, vector<32x16xf32> -> vector<32x16xf32>
    %29 = vector.extract_strided_slice %26 {offsets = [32, 0], sizes = [32, 16], strides = [1, 1]} : vector<96x16xf32> to vector<32x16xf32>
    %30 = arith.addf %28, %29 : vector<32x16xf32>
    %31 = vector.extract_strided_slice %26 {offsets = [64, 0], sizes = [32, 16], strides = [1, 1]} : vector<96x16xf32> to vector<32x16xf32>
    %cst_22 = arith.constant dense<0.000000e+00> : vector<32x16xf32>
    %32 = tpu.matmul %31, %10, %cst_22 {dimension_numbers = #tpu.dot_dimension_numbers<[1], [0], [0], [1], [0, 0, 1, 1], [], []>} : vector<32x16xf32>, vector<16x16xf32>, vector<32x16xf32> -> vector<32x16xf32>
    %33 = arith.addf %30, %32 : vector<32x16xf32>
    %cst_23 = arith.constant 2.000000e-01 : f32
    %34 = vector.broadcast %cst_23 : f32 to vector<32x16xf32>
    %35 = arith.mulf %34, %33 : vector<32x16xf32>
    %36 = arith.maximumf %33, %35 : vector<32x16xf32>
    %c2 = arith.constant 2 : index
    %c0_24 = arith.constant 0 : index
    %c0_25 = arith.constant 0 : index
    %37 = vector.load %arg3[%c2, %c0_24, %c0_25] : memref<3x96x32xf32, #tpu.memory_space<vmem>>, vector<1x96x32xf32>
    %38 = vector.shape_cast %37 : vector<1x96x32xf32> to vector<96x32xf32>
    %cst_26 = arith.constant dense<0.000000e+00> : vector<96x16xf32>
    %39 = tpu.matmul %38, %36, %cst_26 {dimension_numbers = #tpu.dot_dimension_numbers<[1], [0], [0], [1], [0, 0, 1, 1], [], []>} : vector<96x32xf32>, vector<32x16xf32>, vector<96x16xf32> -> vector<96x16xf32>
    %40 = vector.extract_strided_slice %39 {offsets = [0, 0], sizes = [32, 16], strides = [1, 1]} : vector<96x16xf32> to vector<32x16xf32>
    %cst_27 = arith.constant dense<0.000000e+00> : vector<32x16xf32>
    %41 = tpu.matmul %40, %8, %cst_27 {dimension_numbers = #tpu.dot_dimension_numbers<[1], [0], [0], [1], [0, 0, 1, 1], [], []>} : vector<32x16xf32>, vector<16x16xf32>, vector<32x16xf32> -> vector<32x16xf32>
    %42 = vector.extract_strided_slice %39 {offsets = [32, 0], sizes = [32, 16], strides = [1, 1]} : vector<96x16xf32> to vector<32x16xf32>
    %43 = arith.addf %41, %42 : vector<32x16xf32>
    %44 = vector.extract_strided_slice %39 {offsets = [64, 0], sizes = [32, 16], strides = [1, 1]} : vector<96x16xf32> to vector<32x16xf32>
    %cst_28 = arith.constant dense<0.000000e+00> : vector<32x16xf32>
    %45 = tpu.matmul %44, %10, %cst_28 {dimension_numbers = #tpu.dot_dimension_numbers<[1], [0], [0], [1], [0, 0, 1, 1], [], []>} : vector<32x16xf32>, vector<16x16xf32>, vector<32x16xf32> -> vector<32x16xf32>
    %46 = arith.addf %43, %45 : vector<32x16xf32>
    %cst_29 = arith.constant 2.000000e-01 : f32
    %47 = vector.broadcast %cst_29 : f32 to vector<32x16xf32>
    %48 = arith.mulf %47, %46 : vector<32x16xf32>
    %49 = arith.maximumf %46, %48 : vector<32x16xf32>
    %c0_30 = arith.constant 0 : index
    %c0_31 = arith.constant 0 : index
    %50 = vector.load %arg4[%c0_30, %c0_31] : memref<24x32xf32, #tpu.memory_space<vmem>>, vector<24x32xf32>
    %cst_32 = arith.constant dense<0.000000e+00> : vector<24x16xf32>
    %51 = tpu.matmul %50, %49, %cst_32 {dimension_numbers = #tpu.dot_dimension_numbers<[1], [0], [0], [1], [0, 0, 1, 1], [], []>} : vector<24x32xf32>, vector<32x16xf32>, vector<24x16xf32> -> vector<24x16xf32>
    %cst_33 = arith.constant 0.000000e+00 : f32
    %52 = vector.broadcast %cst_33 : f32 to vector<24x16xf32>
    %53 = arith.subf %52, %51 : vector<24x16xf32>
    %54 = math.exp %53 : vector<24x16xf32>
    %cst_34 = arith.constant 1.000000e+00 : f32
    %55 = vector.broadcast %cst_34 : f32 to vector<24x16xf32>
    %56 = arith.addf %55, %54 : vector<24x16xf32>
    %57 = tpu.reciprocal %56 {approx = true} : vector<24x16xf32> -> vector<24x16xf32>
    %58 = vector.extract_strided_slice %57 {offsets = [0, 0], sizes = [16, 16], strides = [1, 1]} : vector<24x16xf32> to vector<16x16xf32>
    %c0_35 = arith.constant 0 : index
    %c0_36 = arith.constant 0 : index
    %59 = vector.load %arg6[%c0_35, %c0_36] : memref<16x128xf32, #tpu.memory_space<vmem>>, vector<16x128xf32>
    %cst_37 = arith.constant dense<0.000000e+00> : vector<16x128xf32>
    %60 = tpu.matmul %58, %59, %cst_37 {dimension_numbers = #tpu.dot_dimension_numbers<[1], [0], [0], [1], [0, 0, 1, 1], [], []>} : vector<16x16xf32>, vector<16x128xf32>, vector<16x128xf32> -> vector<16x128xf32>
    %61 = vector.extract_strided_slice %57 {offsets = [16, 0], sizes = [8, 16], strides = [1, 1]} : vector<24x16xf32> to vector<8x16xf32>
    %c0_38 = arith.constant 0 : index
    %c0_39 = arith.constant 0 : index
    %62 = vector.load %arg7[%c0_38, %c0_39] : memref<16x128xf32, #tpu.memory_space<vmem>>, vector<16x128xf32>
    %cst_40 = arith.constant dense<0.000000e+00> : vector<8x128xf32>
    %63 = tpu.matmul %61, %62, %cst_40 {dimension_numbers = #tpu.dot_dimension_numbers<[1], [0], [0], [1], [0, 0, 1, 1], [], []>} : vector<8x16xf32>, vector<16x128xf32>, vector<8x128xf32> -> vector<8x128xf32>
    %64 = vector.extract_strided_slice %60 {offsets = [0, 0], sizes = [8, 128], strides = [1, 1]} : vector<16x128xf32> to vector<8x128xf32>
    %65 = vector.extract_strided_slice %60 {offsets = [8, 0], sizes = [8, 128], strides = [1, 1]} : vector<16x128xf32> to vector<8x128xf32>
    %c0_41 = arith.constant 0 : index
    %c0_42 = arith.constant 0 : index
    %66 = vector.load %arg9[%c0_41, %c0_42] : memref<8x128xf32, #tpu.memory_space<vmem>>, vector<8x128xf32>
    %67 = arith.mulf %65, %66 : vector<8x128xf32>
    %c0_43 = arith.constant 0 : index
    %c0_44 = arith.constant 0 : index
    %68 = vector.load %arg8[%c0_43, %c0_44] : memref<8x128xf32, #tpu.memory_space<vmem>>, vector<8x128xf32>
    %69 = arith.addf %67, %68 : vector<8x128xf32>
    %70 = arith.addf %69, %63 : vector<8x128xf32>
    %71 = math.sin %70 : vector<8x128xf32>
    %72 = arith.mulf %64, %71 : vector<8x128xf32>
    %cst_45 = arith.constant dense<0.000000e+00> : vector<128xf32>
    %73 = vector.multi_reduction <add>, %72, %cst_45 [0] : vector<8x128xf32> to vector<128xf32>
    %74 = vector.shape_cast %73 : vector<128xf32> to vector<1x128xf32>
    %c0_46 = arith.constant 0 : index
    %c0_47 = arith.constant 0 : index
    %75 = memref.load %arg10[%c0_46, %c0_47] : memref<1x1xf32, #tpu.memory_space<smem>>
    %76 = vector.broadcast %75 : f32 to vector<1x128xf32>
    %77 = arith.mulf %76, %74 : vector<1x128xf32>
    %c0_48 = arith.constant 0 : index
    %c0_49 = arith.constant 0 : index
    %c0_50 = arith.constant 0 : index
    %78 = vector.load %arg11[%c0_48, %c0_49, %c0_50] : memref<1x1x128xf32, #tpu.memory_space<vmem>>, vector<1x1x128xf32>
    %79 = vector.shape_cast %78 : vector<1x1x128xf32> to vector<1x128xf32>
    %80 = vector.shape_cast %77 : vector<1x128xf32> to vector<1x1x128xf32>
    tpu.vector_store %arg11[%c0_48, %c0_49, %c0_50], %80 {strides = array<i32>} : memref<1x1x128xf32, #tpu.memory_space<vmem>>, vector<1x1x128xf32>,
    return
  }
  func.func @transform_0(%arg0: i32) -> (i32, i32, i32) {
    %c0_i32 = arith.constant 0 : i32
    %c0_i32_0 = arith.constant 0 : i32
    %c0_i32_1 = arith.constant 0 : i32
    return %arg0, %c0_i32, %c0_i32_0 : i32, i32, i32
  }
  func.func @transform_1(%arg0: i32) -> (i32, i32) {
    %c0_i32 = arith.constant 0 : i32
    %c0_i32_0 = arith.constant 0 : i32
    %c0_i32_1 = arith.constant 0 : i32
    return %c0_i32, %c0_i32_0 : i32, i32
  }
  func.func @transform_2(%arg0: i32) -> (i32, i32, i32) {
    %c0_i32 = arith.constant 0 : i32
    %c0_i32_0 = arith.constant 0 : i32
    %c0_i32_1 = arith.constant 0 : i32
    %c0_i32_2 = arith.constant 0 : i32
    return %c0_i32, %c0_i32_0, %c0_i32_1 : i32, i32, i32
  }
  func.func @transform_3(%arg0: i32) -> (i32, i32) {
    %c0_i32 = arith.constant 0 : i32
    %c0_i32_0 = arith.constant 0 : i32
    %c0_i32_1 = arith.constant 0 : i32
    return %c0_i32, %c0_i32_0 : i32, i32
  }
  func.func @transform_4(%arg0: i32) -> (i32, i32, i32) {
    %c0_i32 = arith.constant 0 : i32
    %c0_i32_0 = arith.constant 0 : i32
    %c0_i32_1 = arith.constant 0 : i32
    %c0_i32_2 = arith.constant 0 : i32
    return %c0_i32, %c0_i32_0, %c0_i32_1 : i32, i32, i32
  }
  func.func @transform_5(%arg0: i32) -> (i32, i32) {
    %c0_i32 = arith.constant 0 : i32
    %c0_i32_0 = arith.constant 0 : i32
    %c0_i32_1 = arith.constant 0 : i32
    return %c0_i32, %c0_i32_0 : i32, i32
  }
  func.func @transform_6(%arg0: i32) -> (i32, i32) {
    %c0_i32 = arith.constant 0 : i32
    %c0_i32_0 = arith.constant 0 : i32
    %c0_i32_1 = arith.constant 0 : i32
    return %c0_i32, %c0_i32_0 : i32, i32
  }
  func.func @transform_7(%arg0: i32) -> (i32, i32) {
    %c0_i32 = arith.constant 0 : i32
    %c0_i32_0 = arith.constant 0 : i32
    %c0_i32_1 = arith.constant 0 : i32
    return %c0_i32, %c0_i32_0 : i32, i32
  }
  func.func @transform_8(%arg0: i32) -> (i32, i32) {
    %c0_i32 = arith.constant 0 : i32
    %c0_i32_0 = arith.constant 0 : i32
    %c0_i32_1 = arith.constant 0 : i32
    return %c0_i32, %c0_i32_0 : i32, i32
  }
  func.func @transform_9(%arg0: i32) -> (i32, i32) {
    %c0_i32 = arith.constant 0 : i32
    %c0_i32_0 = arith.constant 0 : i32
    %c0_i32_1 = arith.constant 0 : i32
    return %c0_i32, %c0_i32_0 : i32, i32
  }
  func.func @transform_10(%arg0: i32) -> (i32, i32, i32) {
    %c0_i32 = arith.constant 0 : i32
    %c0_i32_0 = arith.constant 0 : i32
    %c0_i32_1 = arith.constant 0 : i32
    return %arg0, %c0_i32, %c0_i32_0 : i32, i32, i32
  }
}

</mosaic_0001>

<bundles_post_ra>
// kernel: tpu_custom_call.1
= control target key start
LH: loop header
LB: loop body
LE: loop exit
PB: predicated region body
PF: predicated region fallthrough
CT: control target
= control target key end

     0   :  { %vm55_vm0 = vcmask 1043456   ;;  %vm42_vm1 = vcmask 31744   ;;  %s1502_s0 = inlined_call_operand.vmem [shape: f32[1,4,16], index: 0, kind: input, shape index: {}]   ;;  %s1503_s1 = inlined_call_operand.vmem [shape: f32[32,4], index: 1, kind: input, shape index: {}]   ;;  %s1504_s2 = inlined_call_operand.vmem [shape: f32[3,96,32], index: 2, kind: input, shape index: {}]   ;;  %s1505_s3 = inlined_call_operand.vmem [shape: f32[24,32], index: 3, kind: input, shape index: {}]   ;;  %s1506_s4 = inlined_call_operand.vmem [shape: f32[2,16,16], index: 4, kind: input, shape index: {}]   ;;  %s1507_s5 = inlined_call_operand.vmem [shape: f32[16,128], index: 5, kind: input, shape index: {}]   ;;  %s1508_s6 = inlined_call_operand.vmem [shape: f32[16,128], index: 6, kind: input, shape index: {}]   ;;  %s1509_s7 = inlined_call_operand.vmem [shape: f32[8,128], index: 7, kind: input, shape index: {}]   ;;  %s1510_s8 = inlined_call_operand.vmem [shape: f32[8,128], index: 8, kind: input, shape index: {}]   ;;  %s1511_s9 = inlined_call_operand.<no memory space> [shape: f32[1,1], index: 9, kind: input, shape index: {}]   ;;  %s1512_s10 = inlined_call_operand.hbm [shape: f32[1,1,128], index: 10, kind: output, shape index: {}]  }
   0x1   :  { %v37_v0 = vld [vmem:[%s1502_s0] sm:$0xf] }
   0x2   :  { %v38_v1 = vld [vmem:[%s1503_s1] sm:$0xff]  ;;  %986 = vmatpush.msk.msra.mxu0 %vm55_vm0, %v37_v0 }
   0x3   :  { %16 = vsyncpa [#allocation4], 0  ;;  %987 = vmatmul.msk.f32.vlgmr.msra.gmra.mxu0 %vm42_vm1, %v38_v1  ;;  %v39_v2 = vld [vmem:[%s1503_s1 + $0x8] sm:$0xff]  ;;  %v40_v3 = vld [vmem:[%s1503_s1 + $0x10] sm:$0xff]  ;;  %vm113_vm2 = vcmask 261120   ;;  %vm203_vm3 = vcmask 130048  }
   0x4   :  { %v41_v4 = vld [vmem:[%s1503_s1 + $0x18] sm:$0xff]  ;;  %v101_v17 = vld [vmem:[%s1504_s2] sm:$0xff]  ;;  %v102_v18 = vld [vmem:[%s1504_s2 + $0x8] sm:$0xff]  ;;  %s1143_s24 = smov [#allocation3]   ;;  %s977_s28 = sshll.u32 %s1512_s10, 4  ;;  %s978_s28 = int_to_ptr.hbm [resolvable:$true] %s977_s28 }
   0x5   :  { %v103_v19 = vld [vmem:[%s1504_s2 + $0x10] sm:$0xff]  ;;  %v104_v20 = vld [vmem:[%s1504_s2 + $0x18] sm:$0xff]  ;;  %v105_v21 = vld [vmem:[%s1504_s2 + $0x20] sm:$0xff]  ;;  %s975_s25 = sshll.u32 %s1143_s24, 4  ;;  %s976_s25 = int_to_ptr.vmem [resolvable:$true] %s975_s25 }
   0x6   :  { %v106_v22 = vld [vmem:[%s1504_s2 + $0x28] sm:$0xff]  ;;  %v107_v23 = vld [vmem:[%s1504_s2 + $0x30] sm:$0xff]  ;;  %v108_v24 = vld [vmem:[%s1504_s2 + $0x38] sm:$0xff] }
   0x7   :  { %v97_v25 = vld [vmem:[%s1506_s4 + $0x8] sm:$0xff]  ;;  %v109_v26 = vld [vmem:[%s1504_s2 + $0x40] sm:$0xff]  ;;  %v111_v28 = vld [vmem:[%s1504_s2 + $0x50] sm:$0xff] }
   0x8   :  { %230 = vmatpush.msrb.mxu0 %v97_v25  ;;  %1086 = vmatpush.msra.mxu2 %v97_v25  ;;  %v110_v27 = vld [vmem:[%s1504_s2 + $0x48] sm:$0xff]  ;;  %v112_v29 = vld [vmem:[%s1504_s2 + $0x58] sm:$0xff]  ;;  %v96_v30 = vld [vmem:[%s1506_s4] sm:$0xff] }
   0x9   :  { %1087 = vmatpush.msra.mxu3 %v97_v25  ;;  %v1274_v35 = vld [vmem:[%s1506_s4 + $0x18] sm:$0xff]  ;;  %v1281_v36 = vld [vmem:[%s1506_s4 + $0x10] sm:$0xff] }
   0xa   :  { %231 = vmatpush.msrb.mxu0 %v96_v30  ;;  %1088 = vmatpush.msra.mxu2 %v96_v30 }
   0xb   :  { %988 = vmatmul.msk.f32.gmra.mxu0 %vm42_vm1, %v39_v2  ;;  %1089 = vmatpush.msra.mxu3 %v96_v30 }
   0xc   :  { %426 = vmatpush.msrb.mxu2 %v97_v25 }
   0xd   :  { %271 = vmatpush.msrb.mxu3 %v1274_v35 }
   0xe   :  { %427 = vmatpush.msrb.mxu2 %v96_v30 }
   0xf   :  { %272 = vmatpush.msrb.mxu3 %v1281_v36 }
  0x13   :  { %989 = vmatmul.msk.f32.gmra.mxu0 %vm42_vm1, %v40_v3 }
  0x1b   :  { %990 = vmatmul.msk.f32.gmra.mxu0 %vm42_vm1, %v41_v4 }
  0x80   :  { %v76_v5 = vpop.f32.mrf.mxu0 }
  0x81   :  { %v88_v13 = vmul.f32 0.2, %v76_v5 }
  0x83   :  { %v92_v16 = vmax.f32 %v76_v5, %v88_v13  ;;  %v1013_v5 = vld [vmem:[%s1504_s2 + $0x60] sm:$0xff] }
  0x84   :  { %v1021_v13 = vld [vmem:[%s1504_s2 + $0xa0] sm:$0xff] }
  0x88   :  { %v79_v6 = vpop.f32.mrf.mxu0 }
  0x89   :  { %v89_v11 = vmul.f32 0.2, %v79_v6 }
  0x8b   :  { %v93_v15 = vmax.f32 %v79_v6, %v89_v11  ;;  %v1014_v6 = vld [vmem:[%s1504_s2 + $0x68] sm:$0xff]  ;;  %v1019_v11 = vld [vmem:[%s1504_s2 + $0x90] sm:$0xff] }
  0x90   :  { %v82_v7 = vpop.f32.mrf.mxu0 }
  0x91   :  { %v90_v9 = vmul.f32 0.2, %v82_v7 }
  0x93   :  { %v94_v14 = vmax.f32 %v82_v7, %v90_v9  ;;  %v1015_v7 = vld [vmem:[%s1504_s2 + $0x70] sm:$0xff]  ;;  %v1017_v9 = vld [vmem:[%s1504_s2 + $0x80] sm:$0xff] }
  0x98   :  { %v85_v8 = vpop.f32.mrf.mxu0 }
  0x99   :  { %v91_v10 = vmul.f32 0.2, %v85_v8 }
  0x9b   :  { %v95_v12 = vmax.f32 %v85_v8, %v91_v10  ;;  %v1016_v8 = vld [vmem:[%s1504_s2 + $0x78] sm:$0xff]  ;;  %v1018_v10 = vld [vmem:[%s1504_s2 + $0x88] sm:$0xff] }
  0x9d   :  { %162 = vmatpush.msra.mxu1 %v95_v12  ;;  %v1020_v12 = vld [vmem:[%s1504_s2 + $0x98] sm:$0xff] }
  0x9f   :  { %163 = vmatpush.msra.mxu1 %v94_v14  ;;  %v1022_v14 = vld [vmem:[%s1504_s2 + $0xa8] sm:$0xff] }
  0xa1   :  { %164 = vmatpush.msra.mxu1 %v93_v15  ;;  %v1023_v15 = vld [vmem:[%s1504_s2 + $0xb0] sm:$0xff] }
  0xa3   :  { %165 = vmatpush.msra.mxu1 %v92_v16  ;;  %v1024_v16 = vld [vmem:[%s1504_s2 + $0xb8] sm:$0xff] }
  0xa4   :  { %993 = vmatmul.msk.f32.vlgmr.msra.gmra.mxu1 %vm113_vm2, %v101_v17 }
  0xac   :  { %994 = vmatmul.msk.f32.gmra.mxu1 %vm113_vm2, %v102_v18 }
  0xb4   :  { %995 = vmatmul.msk.f32.gmra.mxu1 %vm113_vm2, %v103_v19 }
  0xbc   :  { %996 = vmatmul.msk.f32.gmra.mxu1 %vm113_vm2, %v104_v20 }
  0xc4   :  { %997 = vmatmul.msk.f32.gmra.mxu1 %vm113_vm2, %v105_v21 }
  0xcc   :  { %998 = vmatmul.msk.f32.gmra.mxu1 %vm113_vm2, %v106_v22 }
  0xd4   :  { %999 = vmatmul.msk.f32.gmra.mxu1 %vm113_vm2, %v107_v23 }
  0xdc   :  { %1000 = vmatmul.msk.f32.gmra.mxu1 %vm113_vm2, %v108_v24 }
  0xe4   :  { %1001 = vmatmul.msk.f32.gmra.mxu1 %vm113_vm2, %v109_v26 }
  0xec   :  { %1002 = vmatmul.msk.f32.gmra.mxu1 %vm113_vm2, %v110_v27 }
  0xf4   :  { %1003 = vmatmul.msk.f32.gmra.mxu1 %vm113_vm2, %v111_v28 }
  0xfc   :  { %1004 = vmatmul.msk.f32.gmra.mxu1 %vm113_vm2, %v112_v29 }
 0x121   :  { %v167_v31 = vpop.f32.mrf.mxu1 }
 0x122   :  { %1005 = vmatmul.msk.f32.vlgmr.msrb.gmra.mxu0 %vm203_vm3, %v167_v31 }
 0x129   :  { %v170_v32 = vpop.f32.mrf.mxu1 }
 0x12a   :  { %1006 = vmatmul.msk.f32.vlgmr.msra.gmra.mxu2 %vm203_vm3, %v170_v32 }
 0x131   :  { %v173_v33 = vpop.f32.mrf.mxu1 }
 0x132   :  { %1007 = vmatmul.msk.f32.vlgmr.msra.gmra.mxu3 %vm203_vm3, %v173_v33 }
 0x133   :  { %467 = vmatpush.msra.mxu3 %v1274_v35 }
 0x135   :  { %468 = vmatpush.msra.mxu3 %v1281_v36 }
 0x139   :  { %v176_v34 = vpop.f32.mrf.mxu1 }
 0x13a   :  { %1008 = vmatmul.msk.f32.gmra.mxu3 %vm203_vm3, %v176_v34 }
 0x141   :  { %v179_v37 = vpop.f32.mrf.mxu1 }
 0x149   :  { %v182_v38 = vpop.f32.mrf.mxu1 }
 0x151   :  { %v185_v39 = vpop.f32.mrf.mxu1 }
 0x159   :  { %v188_v40 = vpop.f32.mrf.mxu1 }
 0x161   :  { %v191_v41 = vpop.f32.mrf.mxu1 }
 0x162   :  { %1009 = vmatmul.msk.f32.vlgmr.msrb.gmra.mxu3 %vm203_vm3, %v191_v41 }
 0x163   :  { %622 = vmatpush.msrb.mxu3 %v97_v25 }
 0x165   :  { %623 = vmatpush.msrb.mxu3 %v96_v30 }
 0x169   :  { %v194_v42 = vpop.f32.mrf.mxu1 }
 0x16a   :  { %1010 = vmatmul.msk.f32.gmra.mxu3 %vm203_vm3, %v194_v42 }
 0x171   :  { %v197_v43 = vpop.f32.mrf.mxu1 }
 0x172   :  { %1011 = vmatmul.msk.f32.gmra.mxu3 %vm203_vm3, %v197_v43 }
 0x179   :  { %v200_v44 = vpop.f32.mrf.mxu1 }
 0x17a   :  { %1012 = vmatmul.msk.f32.gmra.mxu3 %vm203_vm3, %v200_v44 }
 0x19f   :  { %v233_v52 = vpop.f32.mrf.mxu0 }
 0x1a0   :  { %v234_v57 = vadd.f32 %v233_v52, %v179_v37 }
 0x1ad   :  { %v236_v50 = vpop.f32.mrf.mxu2 }
 0x1ae   :  { %v237_v53 = vadd.f32 %v236_v50, %v182_v38 }
 0x1b5   :  { %v239_v45 = vpop.f32.mrf.mxu3 }
 0x1b6   :  { %v240_v51 = vadd.f32 %v239_v45, %v185_v39 }
 0x1bd   :  { %v242_v46 = vpop.f32.mrf.mxu3 }
 0x1be   :  { %v243_v54 = vadd.f32 %v242_v46, %v188_v40 }
 0x1e5   :  { %v274_v47 = vpop.f32.mrf.mxu3 }
 0x1e6   :  { %v286_v60 = vadd.f32 %v274_v47, %v234_v57  ;;  %v1049_v57 = vld [vmem:[%s1504_s2 + $0xe0] sm:$0xff] }
 0x1e8   :  { %v290_v1 = vmul.f32 0.2, %v286_v60 }
 0x1ea   :  { %v294_v4 = vmax.f32 %v286_v60, %v290_v1  ;;  %v1052_v60 = vld [vmem:[%s1504_s2 + $0xf8] sm:$0xff] }
 0x1ed   :  { %v277_v48 = vpop.f32.mrf.mxu3 }
 0x1ee   :  { %v287_v58 = vadd.f32 %v277_v48, %v237_v53  ;;  %v1045_v53 = vld [vmem:[%s1504_s2 + $0xc0] sm:$0xff] }
 0x1f0   :  { %v291_v63 = vmul.f32 0.2, %v287_v58 }
 0x1f2   :  { %v295_v3 = vmax.f32 %v287_v58, %v291_v63  ;;  %v1050_v58 = vld [vmem:[%s1504_s2 + $0xe8] sm:$0xff]  ;;  %v1055_v63 = vld [vmem:[%s1504_s2 + $0x110] sm:$0xff] }
 0x1f5   :  { %v280_v49 = vpop.f32.mrf.mxu3 }
 0x1f6   :  { %v288_v55 = vadd.f32 %v280_v49, %v240_v51 }
 0x1f8   :  { %v292_v61 = vmul.f32 0.2, %v288_v55 }
 0x1fa   :  { %v296_v2 = vmax.f32 %v288_v55, %v292_v61  ;;  %v1047_v55 = vld [vmem:[%s1504_s2 + $0xd0] sm:$0xff]  ;;  %v1053_v61 = vld [vmem:[%s1504_s2 + $0x100] sm:$0xff] }
 0x1fd   :  { %v283_v56 = vpop.f32.mrf.mxu3 }
 0x1fe   :  { %v289_v59 = vadd.f32 %v283_v56, %v243_v54  ;;  %v1046_v54 = vld [vmem:[%s1504_s2 + $0xc8] sm:$0xff]  ;;  %v1048_v56 = vld [vmem:[%s1504_s2 + $0xd8] sm:$0xff] }
 0x200   :  { %v293_v62 = vmul.f32 0.2, %v289_v59 }
 0x202   :  { %v297_v0 = vmax.f32 %v289_v59, %v293_v62  ;;  %v1051_v59 = vld [vmem:[%s1504_s2 + $0xf0] sm:$0xff]  ;;  %v1054_v62 = vld [vmem:[%s1504_s2 + $0x108] sm:$0xff] }
 0x204   :  { %359 = vmatpush.msra.mxu0 %v297_v0  ;;  %v1056_v0 = vld [vmem:[%s1504_s2 + $0x118] sm:$0xff] }
 0x206   :  { %360 = vmatpush.msra.mxu0 %v296_v2 }
 0x208   :  { %361 = vmatpush.msra.mxu0 %v295_v3 }
 0x20a   :  { %362 = vmatpush.msra.mxu0 %v294_v4 }
 0x20b   :  { %1025 = vmatmul.msk.f32.vlgmr.msra.gmra.mxu0 %vm113_vm2, %v1013_v5 }
 0x213   :  { %1026 = vmatmul.msk.f32.gmra.mxu0 %vm113_vm2, %v1014_v6 }
 0x21b   :  { %1027 = vmatmul.msk.f32.gmra.mxu0 %vm113_vm2, %v1015_v7 }
 0x223   :  { %1028 = vmatmul.msk.f32.gmra.mxu0 %vm113_vm2, %v1016_v8 }
 0x22b   :  { %1029 = vmatmul.msk.f32.gmra.mxu0 %vm113_vm2, %v1017_v9 }
 0x233   :  { %1030 = vmatmul.msk.f32.gmra.mxu0 %vm113_vm2, %v1018_v10 }
 0x23b   :  { %1031 = vmatmul.msk.f32.gmra.mxu0 %vm113_vm2, %v1019_v11 }
 0x243   :  { %1032 = vmatmul.msk.f32.gmra.mxu0 %vm113_vm2, %v1020_v12 }
 0x24b   :  { %1033 = vmatmul.msk.f32.gmra.mxu0 %vm113_vm2, %v1021_v13 }
 0x253   :  { %1034 = vmatmul.msk.f32.gmra.mxu0 %vm113_vm2, %v1022_v14 }
 0x25b   :  { %1035 = vmatmul.msk.f32.gmra.mxu0 %vm113_vm2, %v1023_v15 }
 0x263   :  { %1036 = vmatmul.msk.f32.gmra.mxu0 %vm113_vm2, %v1024_v16 }
 0x288   :  { %v364_v17 = vpop.f32.mrf.mxu0 }
 0x289   :  { %1037 = vmatmul.msk.f32.vlgmr.msrb.gmra.mxu2 %vm203_vm3, %v364_v17 }
 0x290   :  { %v367_v18 = vpop.f32.mrf.mxu0 }
 0x291   :  { %1038 = vmatmul.msk.f32.gmra.mxu2 %vm203_vm3, %v367_v18 }
 0x298   :  { %v370_v19 = vpop.f32.mrf.mxu0 }
 0x299   :  { %1039 = vmatmul.msk.f32.gmra.mxu2 %vm203_vm3, %v370_v19 }
 0x2a0   :  { %v373_v20 = vpop.f32.mrf.mxu0 }
 0x2a1   :  { %1040 = vmatmul.msk.f32.gmra.mxu2 %vm203_vm3, %v373_v20 }
 0x2a8   :  { %v376_v21 = vpop.f32.mrf.mxu0 }
 0x2b0   :  { %v379_v22 = vpop.f32.mrf.mxu0 }
 0x2b8   :  { %v382_v23 = vpop.f32.mrf.mxu0 }
 0x2c0   :  { %v385_v24 = vpop.f32.mrf.mxu0 }
 0x2c8   :  { %v388_v25 = vpop.f32.mrf.mxu0 }
 0x2c9   :  { %1041 = vmatmul.msk.f32.vlgmr.msra.gmra.mxu3 %vm203_vm3, %v388_v25 }
 0x2ca   :  { %663 = vmatpush.msra.mxu3 %v1274_v35 }
 0x2cc   :  { %664 = vmatpush.msra.mxu3 %v1281_v36 }
 0x2d0   :  { %v391_v26 = vpop.f32.mrf.mxu0 }
 0x2d1   :  { %1042 = vmatmul.msk.f32.gmra.mxu3 %vm203_vm3, %v391_v26 }
 0x2d8   :  { %v394_v27 = vpop.f32.mrf.mxu0 }
 0x2d9   :  { %1043 = vmatmul.msk.f32.gmra.mxu3 %vm203_vm3, %v394_v27 }
 0x2e0   :  { %v397_v28 = vpop.f32.mrf.mxu0 }
 0x2e1   :  { %1044 = vmatmul.msk.f32.gmra.mxu3 %vm203_vm3, %v397_v28 }
 0x30c   :  { %v429_v29 = vpop.f32.mrf.mxu2 }
 0x30d   :  { %v430_v41 = vadd.f32 %v429_v29, %v376_v21 }
 0x314   :  { %v432_v30 = vpop.f32.mrf.mxu2 }
 0x315   :  { %v433_v35 = vadd.f32 %v432_v30, %v379_v22 }
 0x31c   :  { %v435_v33 = vpop.f32.mrf.mxu2 }
 0x31d   :  { %v436_v38 = vadd.f32 %v435_v33, %v382_v23 }
 0x324   :  { %v438_v37 = vpop.f32.mrf.mxu2 }
 0x325   :  { %v439_v39 = vadd.f32 %v438_v37, %v385_v24 }
 0x34c   :  { %v470_v31 = vpop.f32.mrf.mxu3 }
 0x34d   :  { %v482_v44 = vadd.f32 %v470_v31, %v430_v41  ;;  %v743_v41 = vld [vmem:[%s1507_s5] sm:$0xff] }
 0x34f   :  { %v486_v49 = vmul.f32 0.2, %v482_v44 }
 0x351   :  { %v490_v52 = vmax.f32 %v482_v44, %v486_v49 }
 0x354   :  { %v473_v32 = vpop.f32.mrf.mxu3 }
 0x355   :  { %v483_v42 = vadd.f32 %v473_v32, %v433_v35  ;;  %v690_v35 = vld [vmem:[%s1505_s3] sm:$0xff] }
 0x357   :  { %v487_v47 = vmul.f32 0.2, %v483_v42 }
 0x359   :  { %v491_v51 = vmax.f32 %v483_v42, %v487_v47  ;;  %v775_v42 = vld [vmem:[%s1508_s6 + $0x8] sm:$0xff] }
 0x35a   :  { %793 = vmatpush.msrb.mxu0 %v775_v42 }
 0x35c   :  { %v476_v34 = vpop.f32.mrf.mxu3 }
 0x35d   :  { %v484_v36 = vadd.f32 %v476_v34, %v436_v38 }
 0x35f   :  { %v488_v45 = vmul.f32 0.2, %v484_v36 }
 0x361   :  { %v492_v50 = vmax.f32 %v484_v36, %v488_v45  ;;  %v692_v36 = vld [vmem:[%s1505_s3 + $0x10] sm:$0xff] }
 0x364   :  { %v479_v40 = vpop.f32.mrf.mxu3 }
 0x365   :  { %v485_v43 = vadd.f32 %v479_v40, %v439_v39  ;;  %v691_v39 = vld [vmem:[%s1505_s3 + $0x8] sm:$0xff] }
 0x366   :  { %v744_v40 = vld [vmem:[%s1507_s5 + $0x8] sm:$0xff] }
 0x367   :  { %v489_v46 = vmul.f32 0.2, %v485_v43 }
 0x369   :  { %v493_v48 = vmax.f32 %v485_v43, %v489_v46  ;;  %v774_v43 = vld [vmem:[%s1508_s6] sm:$0xff] }
 0x36a   :  { %794 = vmatpush.msrb.mxu0 %v774_v43 }
 0x36b   :  { %555 = vmatpush.msra.mxu2 %v493_v48 }
 0x36d   :  { %556 = vmatpush.msra.mxu2 %v492_v50 }
 0x36f   :  { %557 = vmatpush.msra.mxu2 %v491_v51 }
 0x371   :  { %558 = vmatpush.msra.mxu2 %v490_v52 }
 0x372   :  { %1057 = vmatmul.msk.f32.vlgmr.msra.gmra.mxu2 %vm113_vm2, %v1045_v53 }
 0x37a   :  { %1058 = vmatmul.msk.f32.gmra.mxu2 %vm113_vm2, %v1046_v54 }
 0x382   :  { %1059 = vmatmul.msk.f32.gmra.mxu2 %vm113_vm2, %v1047_v55 }
 0x38a   :  { %1060 = vmatmul.msk.f32.gmra.mxu2 %vm113_vm2, %v1048_v56 }
 0x392   :  { %1061 = vmatmul.msk.f32.gmra.mxu2 %vm113_vm2, %v1049_v57 }
 0x39a   :  { %1062 = vmatmul.msk.f32.gmra.mxu2 %vm113_vm2, %v1050_v58 }
 0x3a2   :  { %1063 = vmatmul.msk.f32.gmra.mxu2 %vm113_vm2, %v1051_v59 }
 0x3aa   :  { %1064 = vmatmul.msk.f32.gmra.mxu2 %vm113_vm2, %v1052_v60 }
 0x3b2   :  { %1065 = vmatmul.msk.f32.gmra.mxu2 %vm113_vm2, %v1053_v61 }
 0x3ba   :  { %1066 = vmatmul.msk.f32.gmra.mxu2 %vm113_vm2, %v1054_v62 }
 0x3c2   :  { %1067 = vmatmul.msk.f32.gmra.mxu2 %vm113_vm2, %v1055_v63 }
 0x3ca   :  { %1068 = vmatmul.msk.f32.gmra.mxu2 %vm113_vm2, %v1056_v0  ;;  %v799_v0 = vld [vmem:[%s1510_s8] sm:$0xff] }
 0x3f5   :  { %v560_v1 = vpop.f32.mrf.mxu2 }
 0x3f6   :  { %1069 = vmatmul.msk.f32.vlgmr.msrb.gmra.mxu3 %vm203_vm3, %v560_v1 }
 0x3fd   :  { %v563_v2 = vpop.f32.mrf.mxu2 }
 0x3fe   :  { %1070 = vmatmul.msk.f32.gmra.mxu3 %vm203_vm3, %v563_v2  ;;  %v801_v2 = vld [vmem:[%s1509_s7] sm:$0xff] }
 0x405   :  { %v566_v3 = vpop.f32.mrf.mxu2 }
 0x406   :  { %1071 = vmatmul.msk.f32.gmra.mxu3 %vm203_vm3, %v566_v3 }
 0x40d   :  { %v569_v4 = vpop.f32.mrf.mxu2 }
 0x40e   :  { %1072 = vmatmul.msk.f32.gmra.mxu3 %vm203_vm3, %v569_v4 }
 0x415   :  { %v572_v5 = vpop.f32.mrf.mxu2 }
 0x41d   :  { %v575_v6 = vpop.f32.mrf.mxu2 }
 0x425   :  { %v578_v7 = vpop.f32.mrf.mxu2 }
 0x42d   :  { %v581_v8 = vpop.f32.mrf.mxu2 }
 0x435   :  { %v584_v9 = vpop.f32.mrf.mxu2 }
 0x436   :  { %1073 = vmatmul.msk.f32.vlgmr.msra.gmra.mxu3 %vm203_vm3, %v584_v9 }
 0x43d   :  { %v587_v10 = vpop.f32.mrf.mxu2 }
 0x43e   :  { %1074 = vmatmul.msk.f32.gmra.mxu3 %vm203_vm3, %v587_v10 }
 0x445   :  { %v590_v11 = vpop.f32.mrf.mxu2 }
 0x446   :  { %1075 = vmatmul.msk.f32.gmra.mxu3 %vm203_vm3, %v590_v11 }
 0x44d   :  { %v593_v12 = vpop.f32.mrf.mxu2 }
 0x44e   :  { %1076 = vmatmul.msk.f32.gmra.mxu3 %vm203_vm3, %v593_v12 }
 0x479   :  { %v625_v13 = vpop.f32.mrf.mxu3 }
 0x47a   :  { %v626_v25 = vadd.f32 %v625_v13, %v572_v5 }
 0x481   :  { %v628_v14 = vpop.f32.mrf.mxu3 }
 0x482   :  { %v629_v21 = vadd.f32 %v628_v14, %v575_v6 }
 0x489   :  { %v631_v15 = vpop.f32.mrf.mxu3 }
 0x48a   :  { %v632_v20 = vadd.f32 %v631_v15, %v578_v7 }
 0x491   :  { %v634_v16 = vpop.f32.mrf.mxu3 }
 0x492   :  { %v635_v22 = vadd.f32 %v634_v16, %v581_v8 }
 0x4b9   :  { %v666_v17 = vpop.f32.mrf.mxu3 }
 0x4ba   :  { %v678_v28 = vadd.f32 %v666_v17, %v626_v25  ;;  %v1136_v17 = vmov 683565275   ;;  %v1139_v25 = vmov 2102212464  }
 0x4bc   :  { %v682_v33 = vmul.f32 0.2, %v678_v28 }
 0x4be   :  { %v686_v38 = vmax.f32 %v678_v28, %v682_v33  ;;  %v1140_v28 = vmov 920167782  }
 0x4c1   :  { %v669_v18 = vpop.f32.mrf.mxu3 }
 0x4c2   :  { %v679_v26 = vadd.f32 %v669_v18, %v629_v21 }
 0x4c4   :  { %v683_v31 = vmul.f32 0.2, %v679_v26 }
 0x4c6   :  { %v687_v37 = vmax.f32 %v679_v26, %v683_v31  ;;  %v1141_v31 = vmov 1326507024  }
 0x4c9   :  { %v672_v19 = vpop.f32.mrf.mxu3 }
 0x4ca   :  { %v680_v23 = vadd.f32 %v672_v19, %v632_v20  ;;  %v1137_v19 = vmov 2475754826  }
 0x4cc   :  { %v684_v29 = vmul.f32 0.2, %v680_v23 }
 0x4ce   :  { %v688_v34 = vmax.f32 %v680_v23, %v684_v29 }
 0x4d1   :  { %v675_v24 = vpop.f32.mrf.mxu3 }
 0x4d2   :  { %v681_v27 = vadd.f32 %v675_v24, %v635_v22  ;;  %v1138_v22 = vmov 2131351028  }
 0x4d4   :  { %v685_v30 = vmul.f32 0.2, %v681_v27 }
 0x4d6   :  { %v689_v32 = vmax.f32 %v681_v27, %v685_v30 }
 0x4d8   :  { %714 = vmatpush.msrb.mxu1 %v689_v32 }
 0x4da   :  { %715 = vmatpush.msrb.mxu1 %v688_v34 }
 0x4dc   :  { %716 = vmatpush.msrb.mxu1 %v687_v37 }
 0x4de   :  { %717 = vmatpush.msrb.mxu1 %v686_v38 }
 0x4df   :  { %1077 = vmatmul.msk.f32.vlgmr.msrb.gmra.mxu1 %vm113_vm2, %v690_v35 }
 0x4e0   :  { %765 = vmatpush.msra.mxu1 %v744_v40 }
 0x4e2   :  { %766 = vmatpush.msra.mxu1 %v743_v41 }
 0x4e7   :  { %1078 = vmatmul.msk.f32.gmra.mxu1 %vm113_vm2, %v691_v39 }
 0x4ef   :  { %1079 = vmatmul.msk.f32.gmra.mxu1 %vm113_vm2, %v692_v36 }
 0x55c   :  { %v719_v44 = vpop.f32.mrf.mxu1 }
 0x55d   :  { %v728_v45 = vsub.f32 0.0, %v719_v44 }
 0x55f   :  { %v731_v46 = vmul.f32 1.442695, %v728_v45 }
 0x561   :  { %1098 = vpow2.f32 %v731_v46 }
 0x564   :  { %v722_v47 = vpop.f32.mrf.mxu1 }
 0x565   :  { %v729_v48 = vsub.f32 0.0, %v722_v47 }
 0x567   :  { %v1099_v49 = vpop.eup %1098  ;;  %v733_v50 = vmul.f32 1.442695, %v729_v48 }
 0x568   :  { %v737_v51 = vadd.f32 1.0, %v1099_v49 }
 0x569   :  { %1100 = vpow2.f32 %v733_v50 }
 0x56a   :  { %1102 = vrcp.f32 %v737_v51 }
 0x56c   :  { %v725_v52 = vpop.f32.mrf.mxu1 }
 0x56d   :  { %v730_v53 = vsub.f32 0.0, %v725_v52 }
 0x56f   :  { %v1101_v54 = vpop.eup %1100  ;;  %v735_v55 = vmul.f32 1.442695, %v730_v53 }
 0x570   :  { %v1103_v56 = vpop.eup %1102  ;;  %v738_v57 = vadd.f32 1.0, %v1101_v54 }
 0x571   :  { %1104 = vpow2.f32 %v735_v55  ;;  %1080 = vmatmul.msk.f32.vlgmr.msra.gmra.mxu1 %vm203_vm3, %v1103_v56 }
 0x572   :  { %1106 = vrcp.f32 %v738_v57 }
 0x577   :  { %v1105_v58 = vpop.eup %1104 }
 0x578   :  { %v1107_v59 = vpop.eup %1106  ;;  %v739_v60 = vadd.f32 1.0, %v1105_v58 }
 0x579   :  { %1081 = vmatmul.msk.f32.gmra.mxu1 %vm203_vm3, %v1107_v59 }
 0x57a   :  { %1108 = vrcp.f32 %v739_v60 }
 0x580   :  { %v1109_v61 = vpop.eup %1108 }
 0x581   :  { %1082 = vmatmul.msk.f32.vlgmr.msrb.gmra.mxu0 %vm203_vm3, %v1109_v61 }
 0x5ee   :  { %v1431_v62 = vpop.f32.mrf.mxu1 }
 0x5f6   :  { %v771_v63 = vpop.f32.mrf.mxu1 }
 0x5f7   :  { %v800_v1 = vmul.f32 %v799_v0, %v771_v63 }
 0x5f9   :  { %v802_v3 = vadd.f32 %v801_v2, %v800_v1  ;;  %v1142_v2 = vmov 0  }
 0x5fe   :  { %v796_v4 = vpop.f32.mrf.mxu0 }
 0x5ff   :  { %v1439_v5 = vadd.f32 %v802_v3, %v796_v4 }
 0x601   :  { %v807_v6 = vand.u32 2139095040, %v1439_v5  ;;  %v804_v9 = vand.u32 2147483647, %v1439_v5  ;;  %vm806_vm0 = vcmp.lt.s32.totalorder %v1439_v5, 0 }
 0x603   :  { %v808_v7 = vshrl.u32 %v807_v6, 23  ;;  %v811_v11 = vand.u32 8388607, %v804_v9  ;;  %vm805_vm1 = vcmp.le.f32.partialorder %v804_v9, 0.7853982 }
 0x605   :  { %v1083_v8 = vadd.s32 4294967169, %v808_v7  ;;  %v812_v15 = vor.u32 8388608, %v811_v11 }
 0x607   :  { %v814_v10 = vadd.s32 1, %v1083_v8  ;;  %v1456_v39 = vshll.u32 %v812_v15, 8 }
 0x609   :  { %vm815_vm4 = vcmp.gt.s32.totalorder %v814_v10, 0  ;;  %v853_v47 = vand.u32 65535, %v1456_v39  ;;  %v854_v48 = vshrl.u32 %v1456_v39, 16 }
 0x60a   :  { %v816_v12 = vsel %vm815_vm4, %v814_v10, 0 }
 0x60b   :  { %v818_v13 = vand.u32 31, %v816_v12  ;;  %v1447_v16 = vshrl.u32 %v816_v12, 5 }
 0x60d   :  { %v1445_v14 = vsub.s32 32, %v818_v13  ;;  %v821_v18 = vshll.u32 %v1136_v17, %v818_v13  ;;  %v824_v20 = vshll.u32 %v1137_v19, %v818_v13  ;;  %v827_v24 = vshll.u32 %v1138_v22, %v818_v13 }
 0x60e   :  { %v830_v27 = vshll.u32 %v1139_v25, %v818_v13  ;;  %v833_v30 = vshll.u32 %v1140_v28, %v818_v13  ;;  %vm836_vm5 = vcmp.lt.s32.totalorder %v1447_v16, 1  ;;  %vm839_vm6 = vcmp.lt.s32.totalorder %v1447_v16, 4 }
 0x60f   :  { %v822_v21 = vshrl.u32 %v1137_v19, %v1445_v14  ;;  %v825_v23 = vshrl.u32 %v1138_v22, %v1445_v14  ;;  %v828_v26 = vshrl.u32 %v1139_v25, %v1445_v14  ;;  %v831_v29 = vshrl.u32 %v1140_v28, %v1445_v14 }
 0x610   :  { %v834_v32 = vshrl.u32 %v1141_v31, %v1445_v14  ;;  %vm838_vm7 = vcmp.lt.s32.totalorder %v1447_v16, 3  ;;  %vm837_vm8 = vcmp.lt.s32.totalorder %v1447_v16, 2  ;;  %v820_v13 = vshrl.u32 %v1136_v17, %v1445_v14 }
 0x611   :  { %v823_v33 = vor.u32 %v822_v21, %v821_v18  ;;  %v826_v34 = vor.u32 %v825_v23, %v824_v20  ;;  %v829_v37 = vor.u32 %v828_v26, %v827_v24  ;;  %v832_v38 = vor.u32 %v831_v29, %v830_v27 }
 0x612   :  { %v835_v35 = vor.u32 %v834_v32, %v833_v30 }
 0x613   :  { %v844_v36 = vsel %vm836_vm5, %v823_v33, %v826_v34  ;;  %v848_v40 = vsel %vm836_vm5, %v826_v34, %v829_v37  ;;  %v845_v41 = vsel %vm839_vm6, %v832_v38, 920167782  ;;  %v841_v10 = vsel %vm839_vm6, %v829_v37, 2102212464 }
 0x614   :  { %v849_v42 = vsel %vm839_vm6, %v835_v35, 1326507024  ;;  %v846_v43 = vsel %vm838_vm7, %v829_v37, %v845_v41  ;;  %v840_v22 = vsel %vm836_vm5, %v820_v13, %v823_v33  ;;  %v842_v23 = vsel %vm838_vm7, %v826_v34, %v841_v10 }
 0x615   :  { %v850_v44 = vsel %vm838_vm7, %v832_v38, %v849_v42  ;;  %v847_v45 = vsel %vm837_vm8, %v844_v36, %v846_v43  ;;  %v843_v14 = vsel %vm837_vm8, %v840_v22, %v842_v23  ;;  %vm947_vm5 = vweird.f32 %v1439_v5 }
 0x616   :  { %v851_v46 = vsel %vm837_vm8, %v848_v40, %v850_v44  ;;  %v877_v51 = vand.u32 65535, %v847_v45  ;;  %v878_v52 = vshrl.u32 %v847_v45, 16  ;;  %v897_v31 = vmul.u32 %v1456_v39, %v843_v14 }
 0x617   :  { %v855_v49 = vand.u32 65535, %v851_v46  ;;  %v856_v50 = vshrl.u32 %v851_v46, 16 }
 0x618   :  { %v880_v55 = vmul.u32 %v878_v52, %v853_v47  ;;  %v881_v56 = vmul.u32 %v877_v51, %v854_v48  ;;  %v879_v60 = vmul.u32 %v877_v51, %v853_v47  ;;  %v882_v1 = vmul.u32 %v878_v52, %v854_v48 }
 0x619   :  { %v858_v53 = vmul.u32 %v856_v50, %v853_v47  ;;  %v859_v54 = vmul.u32 %v855_v49, %v854_v48  ;;  %v857_v57 = vmul.u32 %v855_v49, %v853_v47  ;;  %v860_v59 = vmul.u32 %v856_v50, %v854_v48 }
 0x61a   :  { %v883_v61 = vshll.u32 %v880_v55, 16  ;;  %v885_v4 = vshll.u32 %v881_v56, 16  ;;  %v884_v20 = vshrl.u32 %v880_v55, 16  ;;  %v886_v26 = vshrl.u32 %v881_v56, 16 }
 0x61b   :  { %v861_v58 = vshll.u32 %v858_v53, 16  ;;  %v863_v63 = vshll.u32 %v859_v54, 16  ;;  %v862_v15 = vshrl.u32 %v858_v53, 16  ;;  %v864_v24 = vshrl.u32 %v859_v54, 16 }
 0x61c   :  { %vm887_vm10 = vc.u32 %v879_v60, %v883_v61  ;;  %v889_v6 = vadd.s32 %v883_v61, %v879_v60 }
 0x61d   :  { %vm865_vm9 = vc.u32 %v857_v57, %v861_v58  ;;  %v867_v0 = vadd.s32 %v861_v58, %v857_v57  ;;  %v888_v8 = vsel %vm887_vm10, 1, %v1142_v2 }
 0x61e   :  { %v866_v3 = vsel %vm865_vm9, 1, %v1142_v2  ;;  %v890_v12 = vadd.s32 %v888_v8, %v882_v1  ;;  %vm891_vm12 = vc.u32 %v889_v6, %v885_v4  ;;  %v893_v29 = vadd.s32 %v889_v6, %v885_v4 }
 0x61f   :  { %v868_v7 = vadd.s32 %v866_v3, %v860_v59  ;;  %vm869_vm11 = vc.u32 %v867_v0, %v863_v63  ;;  %v892_v19 = vsel %vm891_vm12, 1, %v1142_v2 }
 0x620   :  { %v870_v11 = vsel %vm869_vm11, 1, %v1142_v2  ;;  %v894_v21 = vadd.s32 %v892_v19, %v890_v12 }
 0x621   :  { %v872_v18 = vadd.s32 %v870_v11, %v868_v7 }
 0x622   :  { %v895_v27 = vadd.s32 %v894_v21, %v884_v20 }
 0x623   :  { %v873_v25 = vadd.s32 %v872_v18, %v862_v15 }
 0x624   :  { %v896_v17 = vadd.s32 %v895_v27, %v886_v26 }
 0x625   :  { %v874_v28 = vadd.s32 %v873_v25, %v864_v24 }
 0x626   :  { %v900_v30 = vadd.s32 1, %v896_v17 }
 0x627   :  { %vm899_vm13 = vc.u32 %v874_v28, %v893_v29  ;;  %v898_v16 = vadd.s32 %v893_v29, %v874_v28  ;;  %v967_v29 = vstv %s1511_s9 }
 0x628   :  { %v901_v32 = vsel %vm899_vm13, %v900_v30, %v896_v17 }
 0x629   :  { %v902_v37 = vadd.s32 %v901_v32, %v897_v31 }
 0x62b   :  { %v903_v33 = vadd.s32 536870912, %v902_v37 }
 0x62d   :  { %v904_v38 = vshrl.u32 %v903_v33, 30 }
 0x62f   :  { %v905_v35 = vshll.u32 %v904_v38, 30  ;;  %v928_v56 = vsub.s32 4, %v904_v38 }
 0x631   :  { %v906_v34 = vsub.s32 %v902_v37, %v905_v35  ;;  %v929_v61 = vsel %vm806_vm0, %v928_v56, %v904_v38 }
 0x632   :  { %v931_v1 = vsel %vm805_vm1, 0, %v929_v61 }
 0x633   :  { %vm907_vm14 = vcmp.lt.s32.totalorder %v906_v34, 0  ;;  %v908_v36 = vsub.s32 0, %v906_v34  ;;  %v948_v7 = vadd.s32 3, %v931_v1 }
 0x635   :  { %v909_v40 = vsel %vm907_vm14, %v908_v36, %v906_v34  ;;  %v949_v12 = vand.u32 3, %v948_v7 }
 0x636   :  { %v910_v41 = vclz %v909_v40 }
 0x637   :  { %vm951_vm2 = vcmp.eq.s32.totalorder %v949_v12, 0  ;;  %vm954_vm3 = vcmp.eq.s32.totalorder %v949_v12, 2  ;;  %vm950_vm4 = vcmp.lt.s32.totalorder %v949_v12, 2 }
 0x638   :  { %v1084_v42 = vadd.s32 4294967294, %v910_v41 }
 0x63a   :  { %vm1085_vm15 = vcmp.lt.s32.totalorder %v1084_v42, 0 }
 0x63b   :  { %v913_v43 = vsel %vm1085_vm15, 0, %v1084_v42 }
 0x63c   :  { %v914_v44 = vsub.s32 32, %v913_v43  ;;  %v918_v45 = vsub.s32 4294967266, %v913_v43  ;;  %v915_v46 = vshll.u32 %v906_v34, %v913_v43 }
 0x63e   :  { %v916_v47 = vshrl.u32 %v898_v16, %v914_v44  ;;  %v919_v48 = vadd.s32 127, %v918_v45 }
 0x640   :  { %v917_v39 = vor.u32 %v916_v47, %v915_v46  ;;  %v920_v49 = vshll.u32 %v919_v48, 23 }
 0x642   :  { %v921_v50 = vor.u32 4788187, %v920_v49  ;;  %v924_v52 = vcvt.s32.f32 %v917_v39 }
 0x644   :  { %v922_v51 = vand.u32 2147483647, %v921_v50 }
 0x646   :  { %v925_v53 = vmul.f32 %v924_v52, %v922_v51 }
 0x648   :  { %v926_v54 = vxor.u32 2147483648, %v925_v53 }
 0x64a   :  { %v927_v55 = vsel %vm806_vm0, %v926_v54, %v925_v53 }
 0x64b   :  { %v930_v57 = vsel %vm805_vm1, %v1439_v5, %v927_v55 }
 0x64c   :  { %v932_v58 = vmul.f32 %v930_v57, %v930_v57 }
 0x64e   :  { %v940_v59 = vmul.f32 -0.00019511016, %v932_v58  ;;  %v933_v60 = vmul.f32 -0.001358992, %v932_v58 }
 0x650   :  { %v941_v63 = vadd.f32 0.008332121, %v940_v59  ;;  %v934_v0 = vadd.f32 0.041655596, %v933_v60 }
 0x652   :  { %v942_v2 = vmul.f32 %v941_v63, %v932_v58  ;;  %v935_v3 = vmul.f32 %v934_v0, %v932_v58 }
 0x654   :  { %v943_v4 = vadd.f32 -0.16666654, %v942_v2  ;;  %v936_v6 = vadd.f32 -0.4999988, %v935_v3 }
 0x656   :  { %v944_v8 = vmul.f32 %v943_v4, %v932_v58  ;;  %v937_v10 = vmul.f32 %v936_v6, %v932_v58 }
 0x658   :  { %v945_v11 = vadd.f32 1.0, %v944_v8  ;;  %v938_v9 = vadd.f32 1.0, %v937_v10 }
 0x65a   :  { %v946_v13 = vmul.f32 %v945_v11, %v930_v57  ;;  %v955_v15 = vxor.u32 2147483648, %v938_v9 }
 0x65c   :  { %v952_v18 = vxor.u32 2147483648, %v946_v13  ;;  %v956_v20 = vsel %vm954_vm3, %v955_v15, %v946_v13 }
 0x65e   :  { %v953_v19 = vsel %vm951_vm2, %v938_v9, %v952_v18 }
 0x65f   :  { %v957_v21 = vsel %vm950_vm4, %v953_v19, %v956_v20 }
 0x660   :  { %v958_v22 = vsel %vm947_vm5, nan, %v957_v21 }
 0x661   :  { %v959_v23 = vmul.f32 %v958_v22, %v1431_v62 }
 0x663   :  { %v960_v24 = vrot.slane %v959_v23, 4 }
 0x665   :  { %v961_v25 = vadd.f32 %v960_v24, %v959_v23 }
 0x667   :  { %v962_v26 = vrot.slane %v961_v25, 2 }
 0x669   :  { %v963_v27 = vadd.f32 %v962_v26, %v961_v25 }
 0x66b   :  { %v964_v28 = vrot.slane %v963_v27, 1 }
 0x66d   :  { %v965_v5 = vadd.f32 %v964_v28, %v963_v27 }
 0x66f   :  { %v968_v14 = vmul.f32 %v967_v29, %v965_v5 }
 0x671   :  { %969 = vst [vmem:[#allocation3] sm:$0x1] %v968_v14 }
 0x672   :  { %980 = dma.vmem_to_hbm [thread:$0]  %s976_s25, 16, %s978_s28, [#allocation4]  }
 0x673   :  { %1134 = dma.done.wait [#allocation4], 16  }
 0x674   :  { %1135 = vsyncadd [#allocation4], 4294967280 }
 0x675   :  { %985 = vsyncpa [#allocation4], 1 }

</bundles_post_ra>
